<compile_context>
chip_gen: v6e
topology: v6e:2x2x1
jax: 0.10.0
libtpu: 0.0.40
codegen_flags: <defaults>
</compile_context>

<pallas_src>
import functools
import numpy as np

import jax
import jax.numpy as jnp
from jax.experimental import pallas as pl
from jax.experimental.pallas import tpu as pltpu


_CDT = jnp.bfloat16   # storage / MXU-input dtype
_EPS = 1e-5           # LayerNorm eps (torch default)


# ----------------------------------------------------------------------------
# small helpers
# ----------------------------------------------------------------------------
def _row_plan(M, cap=1024):
    """Pick a row-block size; if M has no nice divisor, pad rows up."""
    for cand in (1024, 512, 256, 128, 64, 32, 16, 8):
        if cand <= cap and M % cand == 0:
            return cand, M
    bm = 8 if M < 128 else 128
    return bm, ((M + bm - 1) // bm) * bm


def _pad_rows(x2d, Mp):
    M = x2d.shape[0]
    if Mp == M:
        return x2d
    return jnp.pad(x2d, ((0, Mp - M), (0, 0)))


def _layernorm_f32(x, g, b):
    mu = jnp.mean(x, axis=-1, keepdims=True)
    var = jnp.mean(jnp.square(x - mu), axis=-1, keepdims=True)
    return (x - mu) * jax.lax.rsqrt(var + _EPS) * g + b


def _gelu_erf(x):
    # exact (erf) GELU via A&S 7.1.26 polynomial, max abs err ~1.5e-7 (f32 noise)
    z = x * 0.7071067811865476
    az = jnp.abs(z)
    t = 1.0 / (1.0 + 0.3275911 * az)
    poly = ((((1.061405429 * t - 1.453152027) * t + 1.421413741) * t
             - 0.284496736) * t + 0.254829592) * t
    erf_abs = 1.0 - poly * jnp.exp(-az * az)
    erf = jnp.where(z >= 0, erf_abs, -erf_abs)
    return 0.5 * x * (1.0 + erf)


# ----------------------------------------------------------------------------
# Pallas kernels
# ----------------------------------------------------------------------------
def _linear_kernel(x_ref, w_ref, b_ref, o_ref):
    # x: (bm, K) bf16, w: (K, N) bf16, b: (1, N) f32
    acc = jnp.dot(x_ref[...], w_ref[...], preferred_element_type=jnp.float32)
    o_ref[...] = (acc + b_ref[...]).astype(o_ref.dtype)


def _layernorm_kernel(x_ref, g_ref, b_ref, o_ref):
    x = x_ref[...].astype(jnp.float32)
    o_ref[...] = _layernorm_f32(x, g_ref[...], b_ref[...]).astype(o_ref.dtype)


def _ln_linear_kernel(x_ref, g_ref, b_ref, w_ref, bias_ref, o_ref):
    # fused pre-LayerNorm + matmul (+ bias)
    x = x_ref[...].astype(jnp.float32)
    xn = _layernorm_f32(x, g_ref[...], b_ref[...]).astype(_CDT)
    acc = jnp.dot(xn, w_ref[...], preferred_element_type=jnp.float32)
    o_ref[...] = (acc + bias_ref[...]).astype(o_ref.dtype)


def _ln_mlp_kernel(x_ref, g_ref, b_ref, w1_ref, b1_ref, w2_ref, b2_ref, o_ref):
    # fused: y = x + fc2(GELU(fc1(LN(x))))   (residual included)
    x = x_ref[...].astype(jnp.float32)
    xn = _layernorm_f32(x, g_ref[...], b_ref[...]).astype(_CDT)
    h = jnp.dot(xn, w1_ref[...], preferred_element_type=jnp.float32) + b1_ref[...]
    h = _gelu_erf(h).astype(_CDT)
    y = jnp.dot(h, w2_ref[...], preferred_element_type=jnp.float32) + b2_ref[...]
    o_ref[...] = (x + y).astype(o_ref.dtype)


def _fused_attn_kernel(x_ref, g_ref, b_ref, wqkv_ref, bqkv_ref, wp_ref, bp_ref,
                       bias_ref, o_ref, *, scale):
    # One grid step processes Gw windows (all windows of 1..B batch elements).
    # x:     (Gw, N, C)     bf16 window tokens (pre-norm1)
    # wqkv:  (3, nH, C, hd) bf16    bqkv: (3, nH, 1, hd) f32
    # wp:    (nH, hd, C)    bf16    bp:   (1, C) f32
    # bias:  (nH, Gw, N, N) f32     rel-pos-bias + shift mask (batch independent)
    G, N, C = x_ref.shape
    nH, hd, _ = wp_ref.shape
    x = x_ref[...].astype(jnp.float32).reshape(G * N, C)
    xn = _layernorm_f32(x, g_ref[...], b_ref[...]).astype(_CDT)          # norm1
    acc = jnp.zeros((G * N, C), jnp.float32) + bp_ref[...]               # proj bias
    for h in range(nH):
        q = (jnp.dot(xn, wqkv_ref[0, h], preferred_element_type=jnp.float32)
             + bqkv_ref[0, h]) * scale
        k = jnp.dot(xn, wqkv_ref[1, h], preferred_element_type=jnp.float32) + bqkv_ref[1, h]
        v = jnp.dot(xn, wqkv_ref[2, h], preferred_element_type=jnp.float32) + bqkv_ref[2, h]
        qh = q.astype(_CDT).reshape(G, N, hd)
        kh = k.astype(_CDT).reshape(G, N, hd)
        vh = v.astype(_CDT).reshape(G, N, hd)
        attn = jnp.einsum('gqd,gkd->gqk', qh, kh,
                          preferred_element_type=jnp.float32)            # (G, N, N)
        attn = attn + bias_ref[h]
        attn = attn - jnp.max(attn, axis=-1, keepdims=True)
        p = jnp.exp(attn)
        p = p * pl.reciprocal(jnp.sum(p, axis=-1, keepdims=True), approx=True)
        ctx = jnp.einsum('gqk,gkd->gqd', p.astype(_CDT), vh,
                         preferred_element_type=jnp.float32)              # (G, N, hd)
        acc = acc + jnp.dot(ctx.reshape(G * N, hd).astype(_CDT), wp_ref[h],
                            preferred_element_type=jnp.float32)           # (G*N, C)
    o_ref[...] = acc.reshape(G, N, C).astype(o_ref.dtype)


# ----------------------------------------------------------------------------
# pallas_call wrappers
# ----------------------------------------------------------------------------
def linear_pallas(x2d, w, b=None):
    M, K = x2d.shape
    N = w.shape[1]
    b2 = (jnp.zeros((1, N), jnp.float32) if b is None
          else jnp.asarray(b, jnp.float32).reshape(1, N))
    bm, Mp = _row_plan(M)
    xp = _pad_rows(x2d, Mp)
    out = pl.pallas_call(
        _linear_kernel,
        out_shape=jax.ShapeDtypeStruct((Mp, N), x2d.dtype),
        grid=(Mp // bm,),
        in_specs=[pl.BlockSpec((bm, K), lambda i: (i, 0)),
                  pl.BlockSpec((K, N), lambda i: (0, 0)),
                  pl.BlockSpec((1, N), lambda i: (0, 0))],
        out_specs=pl.BlockSpec((bm, N), lambda i: (i, 0)),
        compiler_params=pltpu.CompilerParams(dimension_semantics=("parallel",)),
    )(xp, w, b2)
    return out[:M] if Mp != M else out


def layernorm_pallas(x2d, g, b):
    M, C = x2d.shape
    bm, Mp = _row_plan(M)
    xp = _pad_rows(x2d, Mp)
    out = pl.pallas_call(
        _layernorm_kernel,
        out_shape=jax.ShapeDtypeStruct((Mp, C), x2d.dtype),
        grid=(Mp // bm,),
        in_specs=[pl.BlockSpec((bm, C), lambda i: (i, 0)),
                  pl.BlockSpec((1, C), lambda i: (0, 0)),
                  pl.BlockSpec((1, C), lambda i: (0, 0))],
        out_specs=pl.BlockSpec((bm, C), lambda i: (i, 0)),
        compiler_params=pltpu.CompilerParams(dimension_semantics=("parallel",)),
    )(xp, g, b)
    return out[:M] if Mp != M else out


def ln_linear_pallas(x2d, g, b, w, bias=None):
    M, K = x2d.shape
    N = w.shape[1]
    b2 = (jnp.zeros((1, N), jnp.float32) if bias is None
          else jnp.asarray(bias, jnp.float32).reshape(1, N))
    bm, Mp = _row_plan(M)
    xp = _pad_rows(x2d, Mp)
    out = pl.pallas_call(
        _ln_linear_kernel,
        out_shape=jax.ShapeDtypeStruct((Mp, N), x2d.dtype),
        grid=(Mp // bm,),
        in_specs=[pl.BlockSpec((bm, K), lambda i: (i, 0)),
                  pl.BlockSpec((1, K), lambda i: (0, 0)),
                  pl.BlockSpec((1, K), lambda i: (0, 0)),
                  pl.BlockSpec((K, N), lambda i: (0, 0)),
                  pl.BlockSpec((1, N), lambda i: (0, 0))],
        out_specs=pl.BlockSpec((bm, N), lambda i: (i, 0)),
        compiler_params=pltpu.CompilerParams(dimension_semantics=("parallel",)),
    )(xp, g, b, w, b2)
    return out[:M] if Mp != M else out


def ln_mlp_pallas(x2d, g, b, w1, b1, w2, b2):
    M, C = x2d.shape
    Hd = w1.shape[1]
    bm, Mp = _row_plan(M, cap=512)
    xp = _pad_rows(x2d, Mp)
    out = pl.pallas_call(
        _ln_mlp_kernel,
        out_shape=jax.ShapeDtypeStruct((Mp, C), x2d.dtype),
        grid=(Mp // bm,),
        in_specs=[pl.BlockSpec((bm, C), lambda i: (i, 0)),
                  pl.BlockSpec((1, C), lambda i: (0, 0)),
                  pl.BlockSpec((1, C), lambda i: (0, 0)),
                  pl.BlockSpec((C, Hd), lambda i: (0, 0)),
                  pl.BlockSpec((1, Hd), lambda i: (0, 0)),
                  pl.BlockSpec((Hd, C), lambda i: (0, 0)),
                  pl.BlockSpec((1, C), lambda i: (0, 0))],
        out_specs=pl.BlockSpec((bm, C), lambda i: (i, 0)),
        compiler_params=pltpu.CompilerParams(dimension_semantics=("parallel",)),
    )(xp, g, b, w1, b1, w2, b2)
    return out[:M] if Mp != M else out


def fused_window_attention(p, xw):
    """xw: (B_, N, C) windowed tokens (pre-norm1). Returns attn-proj output (B_, N, C)."""
    B_, N, C = xw.shape
    nH, hd, nW = p['num_heads'], p['head_dim'], p['nW']
    B = B_ // nW
    bias_full = p['bias']                        # (nH, nW, N, N), batch independent
    row_cap = 512
    if nW * N <= row_cap:
        k = 1
        for cand in range(B, 0, -1):
            if B % cand == 0 and cand * nW * N <= row_cap:
                k = cand
                break
        Gw = k * nW
        bias_in = jnp.tile(bias_full, (1, k, 1, 1)) if k > 1 else bias_full
        bias_map = lambda i: (0, 0, 0, 0)
    else:
        Gw = 1
        for cand in (64, 32, 16, 8, 4, 2):
            if nW % cand == 0 and cand * N <= row_cap:
                Gw = cand
                break
        bias_in = bias_full
        period = nW // Gw
        bias_map = lambda i: (0, i % period, 0, 0)

    kern = functools.partial(_fused_attn_kernel, scale=float(hd) ** -0.5)
    return pl.pallas_call(
        kern,
        out_shape=jax.ShapeDtypeStruct((B_, N, C), xw.dtype),
        grid=(B_ // Gw,),
        in_specs=[
            pl.BlockSpec((Gw, N, C), lambda i: (i, 0, 0)),
            pl.BlockSpec((1, C), lambda i: (0, 0)),
            pl.BlockSpec((1, C), lambda i: (0, 0)),
            pl.BlockSpec((3, nH, C, hd), lambda i: (0, 0, 0, 0)),
            pl.BlockSpec((3, nH, 1, hd), lambda i: (0, 0, 0, 0)),
            pl.BlockSpec((nH, hd, C), lambda i: (0, 0, 0)),
            pl.BlockSpec((1, C), lambda i: (0, 0)),
            pl.BlockSpec((nH, Gw, N, N), bias_map),
        ],
        out_specs=pl.BlockSpec((Gw, N, C), lambda i: (i, 0, 0)),
        compiler_params=pltpu.CompilerParams(dimension_semantics=("parallel",)),
    )(xw, p['norm1']['g'], p['norm1']['b'], p['wqkv'], p['bqkv'],
      p['wproj'], p['bproj'], bias_in)


# ----------------------------------------------------------------------------
# JAX glue (pure data movement)
# ----------------------------------------------------------------------------
def window_partition(x, ws):
    B, H, W, C = x.shape
    x = x.reshape(B, H // ws, ws, W // ws, ws, C)
    return x.transpose(0, 1, 3, 2, 4, 5).reshape(-1, ws, ws, C)


def window_reverse(windows, ws, H, W):
    B = windows.shape[0] // (H * W // ws // ws)
    x = windows.reshape(B, H // ws, W // ws, ws, ws, -1)
    return x.transpose(0, 1, 3, 2, 4, 5).reshape(B, H, W, -1)


def relative_position_index_np(Wh, Ww):
    coords = np.stack(np.meshgrid(np.arange(Wh), np.arange(Ww), indexing='ij'))
    coords_flat = coords.reshape(2, -1)
    rel = coords_flat[:, :, None] - coords_flat[:, None, :]
    rel = rel.transpose(1, 2, 0).astype(np.int64)
    rel[:, :, 0] += Wh - 1
    rel[:, :, 1] += Ww - 1
    rel[:, :, 0] *= 2 * Ww - 1
    return rel.sum(-1)          # (N, N)


def compute_attn_mask_np(H, W, ws, ss):
    img_mask = np.zeros((1, H, W, 1), np.float32)
    slices = (slice(0, -ws), slice(-ws, -ss), slice(-ss, None))
    cnt = 0
    for h in slices:
        for w in slices:
            img_mask[:, h, w, :] = cnt
            cnt += 1
    mw = img_mask.reshape(1, H // ws, ws, W // ws, ws, 1).transpose(0, 1, 3, 2, 4, 5)
    mw = mw.reshape(-1, ws * ws)
    am = mw[:, None, :] - mw[:, :, None]
    return np.where(am != 0, np.float32(-100.0), np.float32(0.0))   # (nW, N, N)


# ----------------------------------------------------------------------------
# Parameter init (deterministic, synthetic)
# ----------------------------------------------------------------------------
class KeyGen:
    def __init__(self, seed=0):
        self.key = jax.random.PRNGKey(seed)

    def __call__(self):
        self.key, sub = jax.random.split(self.key)
        return sub


def trunc_normal(kg, shape, std=0.02):
    return jax.random.truncated_normal(kg(), -2.0, 2.0, shape, jnp.float32) * std


def init_ln(dim):
    return {'g': jnp.ones((1, dim), jnp.float32), 'b': jnp.zeros((1, dim), jnp.float32)}


def init_swin_block(kg, dim, input_resolution, num_heads, window_size, shift_size,
                    mlp_ratio, qkv_bias):
    # same window/shift adjustment as SwinTransformerBlock.__init__
    if min(input_resolution) <= window_size:
        shift_size = 0
        window_size = min(input_resolution)
    ws = window_size
    H, W = input_resolution
    N = ws * ws
    nW = (H // ws) * (W // ws)
    hd = dim // num_heads
    hidden = int(dim * mlp_ratio)

    qkv_w = trunc_normal(kg, (dim, 3 * dim))
    qkv_b = jnp.zeros((3 * dim,), jnp.float32)
    proj_w = trunc_normal(kg, (dim, dim))
    proj_b = jnp.zeros((dim,), jnp.float32)

    # precompute relative-position-bias (+ shift mask) once, batch independent
    rpb_table = trunc_normal(kg, ((2 * ws - 1) * (2 * ws - 1), num_heads))
    rpb_idx = relative_position_index_np(ws, ws)
    rpb = rpb_table[rpb_idx.reshape(-1)].reshape(N, N, num_heads).transpose(2, 0, 1)  # (nH,N,N)
    if shift_size > 0:
        mask = jnp.asarray(compute_attn_mask_np(H, W, ws, shift_size))               # (nW,N,N)
    else:
        mask = jnp.zeros((nW, N, N), jnp.float32)
    bias_full = rpb[:, None] + mask[None, :]                                          # (nH,nW,N,N)

    return {
        'input_resolution': input_resolution,
        'window_size': ws, 'shift_size': shift_size,
        'num_heads': num_heads, 'head_dim': hd, 'nW': nW,
        'norm1': init_ln(dim), 'norm2': init_ln(dim),
        'wqkv': qkv_w.reshape(dim, 3, num_heads, hd).transpose(1, 2, 0, 3).astype(_CDT),
        'bqkv': qkv_b.reshape(3, num_heads, 1, hd),            # f32 (qkv_bias zeros)
        'wproj': proj_w.reshape(num_heads, hd, dim).astype(_CDT),
        'bproj': proj_b.reshape(1, dim),
        'bias': bias_full.astype(jnp.float32),
        'fc1_w': trunc_normal(kg, (dim, hidden)).astype(_CDT),
        'fc1_b': jnp.zeros((1, hidden), jnp.float32),
        'fc2_w': trunc_normal(kg, (hidden, dim)).astype(_CDT),
        'fc2_b': jnp.zeros((1, dim), jnp.float32),
    }


def init_swin_unet(kg, cfg):
    img_size, ps = cfg['img_size'], cfg['patch_size']
    in_chans, embed_dim = cfg['in_chans'], cfg['embed_dim']
    depths, num_heads, window_size = cfg['depths'], cfg['num_heads'], cfg['window_size']
    mlp_ratio, qkv_bias = cfg['mlp_ratio'], cfg['qkv_bias']
    num_layers = len(depths)
    pr = img_size // ps

    params = {}
    params['patch_embed'] = {
        'proj_w': trunc_normal(kg, (in_chans * ps * ps, embed_dim)).astype(_CDT),
        'proj_b': jnp.zeros((1, embed_dim), jnp.float32),
        'norm': init_ln(embed_dim) if cfg['patch_norm'] else None,
    }

    # ----- encoder -----
    layers = []
    for i in range(num_layers):
        dim = embed_dim * 2 ** i
        res = (pr // 2 ** i, pr // 2 ** i)
        blocks = [init_swin_block(kg, dim, res, num_heads[i], window_size,
                                  0 if d % 2 == 0 else window_size // 2,
                                  mlp_ratio, qkv_bias)
                  for d in range(depths[i])]
        layer = {'blocks': blocks, 'res': res}
        if i < num_layers - 1:
            layer['downsample'] = {'norm': init_ln(4 * dim),
                                   'red_w': trunc_normal(kg, (4 * dim, 2 * dim)).astype(_CDT)}
        layers.append(layer)
    params['layers'] = layers
    params['norm'] = init_ln(embed_dim * 2 ** (num_layers - 1))

    # ----- decoder -----
    layers_up, concat_back = [], []
    for i in range(num_layers):
        dim = embed_dim * 2 ** (num_layers - 1 - i)
        res = (pr // 2 ** (num_layers - 1 - i), pr // 2 ** (num_layers - 1 - i))
        concat_back.append(None if i == 0 else
                           {'w': trunc_normal(kg, (2 * dim, dim)).astype(_CDT),
                            'b': jnp.zeros((1, dim), jnp.float32)})
        if i == 0:
            layers_up.append({'type': 'expand',
                              'expand_w': trunc_normal(kg, (dim, 2 * dim)).astype(_CDT),
                              'norm': init_ln(dim // 2), 'res': res})
        else:
            depth = depths[num_layers - 1 - i]
            heads = num_heads[num_layers - 1 - i]
            blocks = [init_swin_block(kg, dim, res, heads, window_size,
                                      0 if d % 2 == 0 else window_size // 2,
                                      mlp_ratio, qkv_bias)
                      for d in range(depth)]
            up = None
            if i < num_layers - 1:
                up = {'expand_w': trunc_normal(kg, (dim, 2 * dim)).astype(_CDT),
                      'norm': init_ln(dim // 2), 'res': res}
            layers_up.append({'type': 'basic_up', 'blocks': blocks, 'upsample': up})
    params['layers_up'] = layers_up
    params['concat_back_dim'] = concat_back
    params['norm_up'] = init_ln(embed_dim)
    params['final_expand'] = {'expand_w': trunc_normal(kg, (embed_dim, 16 * embed_dim)).astype(_CDT),
                              'norm': init_ln(embed_dim)}

    # 1x1 output conv (bias=False): pad output channels to a lane-dense 128 multiple
    nc = cfg['num_classes']
    nc_pad = ((nc + 127) // 128) * 128
    ow = trunc_normal(kg, (embed_dim, nc))
    params['output_w'] = jnp.pad(ow, ((0, 0), (0, nc_pad - nc))).astype(_CDT)
    return params


# ----------------------------------------------------------------------------
# Forward pass
# ----------------------------------------------------------------------------
def swin_block_fwd(p, x):
    H, W = p['input_resolution']
    ws, ss = p['window_size'], p['shift_size']
    B, L, C = x.shape
    shortcut = x
    xs = x.reshape(B, H, W, C)
    if ss > 0:
        xs = jnp.roll(xs, shift=(-ss, -ss), axis=(1, 2))
    xw = window_partition(xs, ws).reshape(-1, ws * ws, C)
    # fused: norm1 + QKV + attention(+bias+mask) + proj
    aw = fused_window_attention(p, xw).reshape(-1, ws, ws, C)
    xs = window_reverse(aw, ws, H, W)
    if ss > 0:
        xs = jnp.roll(xs, shift=(ss, ss), axis=(1, 2))
    x = shortcut + xs.reshape(B, L, C)            # DropPath identity at inference
    # fused: norm2 + fc1 + GELU + fc2 + residual
    y = ln_mlp_pallas(x.reshape(B * L, C), p['norm2']['g'], p['norm2']['b'],
                      p['fc1_w'], p['fc1_b'], p['fc2_w'], p['fc2_b'])
    return y.reshape(B, L, C)


def patch_merging_fwd(p, x, res):
    H, W = res
    B, L, C = x.shape
    xs = x.reshape(B, H, W, C)
    x0 = xs[:, 0::2, 0::2, :]
    x1 = xs[:, 1::2, 0::2, :]
    x2 = xs[:, 0::2, 1::2, :]
    x3 = xs[:, 1::2, 1::2, :]
    xc = jnp.concatenate([x0, x1, x2, x3], -1).reshape(B * (H // 2) * (W // 2), 4 * C)
    out = ln_linear_pallas(xc, p['norm']['g'], p['norm']['b'], p['red_w'], None)
    return out.reshape(B, (H // 2) * (W // 2), 2 * C)


def patch_expand_fwd(p, x, res):
    H, W = res
    B, L, C = x.shape
    xe = linear_pallas(x.reshape(B * L, C), p['expand_w'], None)     # dim -> 2*dim
    C2 = 2 * C
    xe = xe.reshape(B, H, W, 2, 2, C2 // 4).transpose(0, 1, 3, 2, 4, 5)
    xe = xe.reshape(B * H * 2 * W * 2, C2 // 4)
    out = layernorm_pallas(xe, p['norm']['g'], p['norm']['b'])
    return out.reshape(B, H * 2 * W * 2, C2 // 4)


def final_expand_x4_fwd(p, x, res, embed_dim):
    H, W = res
    B, L, C = x.shape
    xe = linear_pallas(x.reshape(B * L, C), p['expand_w'], None)     # dim -> 16*dim
    xe = xe.reshape(B, H, W, 4, 4, embed_dim).transpose(0, 1, 3, 2, 4, 5)
    xe = xe.reshape(B * 4 * H * 4 * W, embed_dim)
    out = layernorm_pallas(xe, p['norm']['g'], p['norm']['b'])
    return out.reshape(B, 4 * H * 4 * W, embed_dim)


def swin_unet_forward(params, x, cfg):
    # x: NCHW f32.  (The PyTorch wrapper's `x.repeat(1,1,1,1)` when C==1 is a no-op.)
    B, Cin, H, W = x.shape
    ps = cfg['patch_size']
    embed_dim = cfg['embed_dim']
    pr = cfg['img_size'] // ps
    num_layers = len(cfg['depths'])

    # ---- patch embed (stride-ps conv as im2col matmul) ----
    pe = params['patch_embed']
    xp = x.reshape(B, Cin, pr, ps, pr, ps).transpose(0, 2, 4, 1, 3, 5)
    xp = xp.reshape(B * pr * pr, Cin * ps * ps).astype(_CDT)
    xt = linear_pallas(xp, pe['proj_w'], pe['proj_b'])
    if pe['norm'] is not None:
        xt = layernorm_pallas(xt, pe['norm']['g'], pe['norm']['b'])
    xt = xt.reshape(B, pr * pr, embed_dim)

    # ---- encoder ----
    x_downsample = []
    for layer in params['layers']:
        x_downsample.append(xt)
        for blk in layer['blocks']:
            xt = swin_block_fwd(blk, xt)
        if 'downsample' in layer:
            xt = patch_merging_fwd(layer['downsample'], xt, layer['res'])
    Bn, Ln, Cn = xt.shape
    xt = layernorm_pallas(xt.reshape(Bn * Ln, Cn),
                          params['norm']['g'], params['norm']['b']).reshape(Bn, Ln, Cn)

    # ---- decoder ----
    for inx, lup in enumerate(params['layers_up']):
        if inx == 0:
            xt = patch_expand_fwd(lup, xt, lup['res'])
        else:
            xt = jnp.concatenate([xt, x_downsample[(num_layers - 1) - inx]], -1)
            cb = params['concat_back_dim'][inx]
            Bc, Lc, Cc = xt.shape
            xt = linear_pallas(xt.reshape(Bc * Lc, Cc), cb['w'], cb['b']).reshape(Bc, Lc, -1)
            for blk in lup['blocks']:
                xt = swin_block_fwd(blk, xt)
            if lup['upsample'] is not None:
                xt = patch_expand_fwd(lup['upsample'], xt, lup['upsample']['res'])
    Bn, Ln, Cn = xt.shape
    xt = layernorm_pallas(xt.reshape(Bn * Ln, Cn),
                          params['norm_up']['g'], params['norm_up']['b']).reshape(Bn, Ln, Cn)

    # ---- up_x4 + 1x1 output conv (bias=False, lane-padded to 128, sliced after) ----
    xt = final_expand_x4_fwd(params['final_expand'], xt, (pr, pr), embed_dim)
    y = linear_pallas(xt.reshape(-1, embed_dim), params['output_w'], None)
    y = y[:, :cfg['num_classes']].astype(jnp.float32)
    y = y.reshape(B, 4 * pr, 4 * pr, cfg['num_classes']).transpose(0, 3, 1, 2)  # -> NCHW
    return y


# ----------------------------------------------------------------------------
# main
# ----------------------------------------------------------------------------
if __name__ == "__main__":
    # Small config consistent with SwinUnet (4 stages, patch_size=4, in_chans=1).
    # img_size=64 keeps every stage's windows non-degenerate (bottleneck 2x2 windows).
    cfg = dict(img_size=64, patch_size=4, in_chans=1, num_classes=1,
               embed_dim=32, depths=(2, 2, 2, 2), num_heads=(2, 4, 8, 16),
               window_size=4, mlp_ratio=4.0, qkv_bias=True, patch_norm=True)

    kg = KeyGen(seed=0)
    params = init_swin_unet(kg, cfg)

    x = jax.random.normal(jax.random.PRNGKey(0),
                          (2, cfg['in_chans'], cfg['img_size'], cfg['img_size']),
                          jnp.float32)

    logits = swin_unet_forward(params, x, cfg)
    logits = jax.block_until_ready(logits)

    assert logits.shape == (2, cfg['num_classes'], cfg['img_size'], cfg['img_size']), logits.shape
    assert bool(jnp.all(jnp.isfinite(logits)))
    print("KERNEL_OK")
</pallas_src>

<mosaic_0001>
module attributes {stable_mosaic.version = 11 : i64} {
  func.func @_linear_kernel(%arg0: i32, %arg1: memref<512x16xbf16, #tpu.memory_space<vmem>>, %arg2: memref<16x32xbf16, #tpu.memory_space<vmem>>, %arg3: memref<1x32xf32, #tpu.memory_space<vmem>>, %arg4: memref<512x32xbf16, #tpu.memory_space<vmem>>) attributes {dimension_semantics = [#tpu.dimension_semantics<parallel>], iteration_bounds = array<i64: 1>, scalar_prefetch = 0 : i64, scratch_operands = 0 : i64, tpu.core_type = #tpu.core_type<tc>, window_params = [{transform_indices = @transform_0, window_bounds = array<i64: 512, 16>}, {pipeline_mode = #tpu.pipeline_mode<synchronous>, transform_indices = @transform_1, window_bounds = array<i64: 16, 32>}, {pipeline_mode = #tpu.pipeline_mode<synchronous>, transform_indices = @transform_2, window_bounds = array<i64: 1, 32>}, {transform_indices = @transform_3, window_bounds = array<i64: 512, 32>}]} {
    %c0 = arith.constant 0 : index
    %c0_0 = arith.constant 0 : index
    %0 = vector.load %arg1[%c0, %c0_0] : memref<512x16xbf16, #tpu.memory_space<vmem>>, vector<512x16xbf16>
    %c0_1 = arith.constant 0 : index
    %c0_2 = arith.constant 0 : index
    %1 = vector.load %arg2[%c0_1, %c0_2] : memref<16x32xbf16, #tpu.memory_space<vmem>>, vector<16x32xbf16>
    %cst = arith.constant dense<0.000000e+00> : vector<512x32xf32>
    %2 = tpu.matmul %0, %1, %cst {dimension_numbers = #tpu.dot_dimension_numbers<[1], [0], [0], [1], [0, 0, 1, 1], [], []>} : vector<512x16xbf16>, vector<16x32xbf16>, vector<512x32xf32> -> vector<512x32xf32>
    %c0_3 = arith.constant 0 : index
    %c0_4 = arith.constant 0 : index
    %3 = vector.load %arg3[%c0_3, %c0_4] : memref<1x32xf32, #tpu.memory_space<vmem>>, vector<1x32xf32>
    %4 = vector.broadcast %3 : vector<1x32xf32> to vector<512x32xf32>
    %5 = arith.addf %2, %4 : vector<512x32xf32>
    %6 = arith.truncf %5 : vector<512x32xf32> to vector<512x32xbf16>
    %c0_5 = arith.constant 0 : index
    %c0_6 = arith.constant 0 : index
    %7 = vector.load %arg4[%c0_5, %c0_6] : memref<512x32xbf16, #tpu.memory_space<vmem>>, vector<512x32xbf16>
    tpu.vector_store %arg4[%c0_5, %c0_6], %6 {strides = array<i32>} : memref<512x32xbf16, #tpu.memory_space<vmem>>, vector<512x32xbf16>,
    return
  }
  func.func @transform_0(%arg0: i32) -> (i32, i32) {
    %c0_i32 = arith.constant 0 : i32
    %c0_i32_0 = arith.constant 0 : i32
    return %arg0, %c0_i32 : i32, i32
  }
  func.func @transform_1(%arg0: i32) -> (i32, i32) {
    %c0_i32 = arith.constant 0 : i32
    %c0_i32_0 = arith.constant 0 : i32
    %c0_i32_1 = arith.constant 0 : i32
    return %c0_i32, %c0_i32_0 : i32, i32
  }
  func.func @transform_2(%arg0: i32) -> (i32, i32) {
    %c0_i32 = arith.constant 0 : i32
    %c0_i32_0 = arith.constant 0 : i32
    %c0_i32_1 = arith.constant 0 : i32
    return %c0_i32, %c0_i32_0 : i32, i32
  }
  func.func @transform_3(%arg0: i32) -> (i32, i32) {
    %c0_i32 = arith.constant 0 : i32
    %c0_i32_0 = arith.constant 0 : i32
    return %arg0, %c0_i32 : i32, i32
  }
}

</mosaic_0001>

<bundles_post_ra>
// kernel: tpu_custom_call.1
= control target key start
LH: loop header
LB: loop body
LE: loop exit
PB: predicated region body
PF: predicated region fallthrough
CT: control target
= control target key end

     0   :  { %vm254_vm0 = vcmask 130048   ;;  %vm896_vm1 = vcmask 257024   ;;  %s1769_s1 = inlined_call_operand.vmem [shape: bf16[16,32], index: 1, kind: input, shape index: {}]   ;;  %s1770_s0 = inlined_call_operand.vmem [shape: bf16[512,16], index: 0, kind: input, shape index: {}]   ;;  %s1771_s2 = inlined_call_operand.vmem [shape: f32[1,32], index: 2, kind: input, shape index: {}]   ;;  %s1772_s3 = inlined_call_operand.vmem [shape: bf16[512,32], index: 3, kind: output, shape index: {}]  }
   0x1   :  { %v1260_v0 = vld [vmem:[%s1769_s1] sm:$0xff]   ;;  %v1263_v3 = vld [vmem:[%s1770_s0 + $0x8] sm:$0xff]   ;;  %v1265_v5 = vld [vmem:[%s1770_s0 + $0x10] sm:$0xff]  }
   0x2   :  { %v1261_v1 = vld [vmem:[%s1770_s0] sm:$0xff]   ;;  %1192 = vmatprep.subr.bf16.mxu0 %v1260_v0  ;;  %1258 = vmatprep.subr.bf16.mxu1 %v1260_v0  ;;  %v1264_v4 = vld [vmem:[%s1770_s0 + $0x88] sm:$0xff]   ;;  %v1266_v6 = vld [vmem:[%s1770_s0 + $0x90] sm:$0xff]  }
   0x3   :  { %v1262_v2 = vld [vmem:[%s1770_s0 + $0x80] sm:$0xff]   ;;  %1193 = vmatpush3.bf16.msra.mxu0 %v1260_v0  ;;  %1259 = vmatpush3.bf16.msra.mxu1 %v1260_v0  ;;  %v1267_v7 = vld [vmem:[%s1770_s0 + $0x18] sm:$0xff]   ;;  %v1271_v11 = vld [vmem:[%s1770_s0 + $0x28] sm:$0xff]  }
   0x4   :  { %1194 = vmatprep.mubr.msk.bf16.mxu0 %vm254_vm0, %v1261_v1  ;;  %1226 = vmatprep.mubr.msk.bf16.mxu1 %vm254_vm0, %v1262_v2  ;;  %v1268_v8 = vld [vmem:[%s1770_s0 + $0x98] sm:$0xff]   ;;  %v1269_v9 = vld [vmem:[%s1770_s0 + $0x20] sm:$0xff]   ;;  %v1272_v12 = vld [vmem:[%s1770_s0 + $0xa8] sm:$0xff]  }
   0x5   :  { %v1270_v10 = vld [vmem:[%s1770_s0 + $0xa0] sm:$0xff]   ;;  %v1273_v13 = vld [vmem:[%s1770_s0 + $0x30] sm:$0xff]   ;;  %v1275_v15 = vld [vmem:[%s1770_s0 + $0x38] sm:$0xff]  }
   0x6   :  { %1195 = vmatmul.mubr.msk.bf16.vlgmr.msra.gmra.mxu0 %vm254_vm0, %v1263_v3  ;;  %1227 = vmatmul.mubr.msk.bf16.vlgmr.msra.gmra.mxu1 %vm254_vm0, %v1264_v4  ;;  %v1274_v14 = vld [vmem:[%s1770_s0 + $0xb0] sm:$0xff]   ;;  %v1276_v16 = vld [vmem:[%s1770_s0 + $0xb8] sm:$0xff]   ;;  %v1277_v17 = vld [vmem:[%s1770_s0 + $0x40] sm:$0xff]  }
   0x7   :  { %1198 = vmatprep.mubr.msk.bf16.mxu0 %vm254_vm0, %v1265_v5  ;;  %1230 = vmatprep.mubr.msk.bf16.mxu1 %vm254_vm0, %v1266_v6  ;;  %v1278_v18 = vld [vmem:[%s1770_s0 + $0xc0] sm:$0xff]   ;;  %v1279_v19 = vld [vmem:[%s1770_s0 + $0x48] sm:$0xff]   ;;  %v1281_v21 = vld [vmem:[%s1770_s0 + $0x50] sm:$0xff]  }
   0x8   :  { %v1280_v20 = vld [vmem:[%s1770_s0 + $0xc8] sm:$0xff]   ;;  %v1282_v22 = vld [vmem:[%s1770_s0 + $0xd0] sm:$0xff]   ;;  %v1283_v23 = vld [vmem:[%s1770_s0 + $0x58] sm:$0xff]  }
   0x9   :  { %v1284_v24 = vld [vmem:[%s1770_s0 + $0xd8] sm:$0xff]   ;;  %v1285_v25 = vld [vmem:[%s1770_s0 + $0x60] sm:$0xff]   ;;  %v1287_v27 = vld [vmem:[%s1770_s0 + $0x68] sm:$0xff]  }
   0xa   :  { %v1286_v26 = vld [vmem:[%s1770_s0 + $0xe0] sm:$0xff]   ;;  %v1288_v28 = vld [vmem:[%s1770_s0 + $0xe8] sm:$0xff]   ;;  %v1289_v29 = vld [vmem:[%s1770_s0 + $0x70] sm:$0xff]  }
   0xb   :  { %v1290_v30 = vld [vmem:[%s1770_s0 + $0xf0] sm:$0xff]   ;;  %v1291_v31 = vld [vmem:[%s1770_s0 + $0x78] sm:$0xff]   ;;  %v1447_v33 = vld [vmem:[%s1771_s2] ss:$0 sm:$0xff] }
   0xc   :  { %v1292_v32 = vld [vmem:[%s1770_s0 + $0xf8] sm:$0xff]  }
   0xe   :  { %1199 = vmatmul.mubr.msk.bf16.gmra.mxu0 %vm254_vm0, %v1267_v7  ;;  %1231 = vmatmul.mubr.msk.bf16.gmra.mxu1 %vm254_vm0, %v1268_v8 }
   0xf   :  { %1202 = vmatprep.mubr.msk.bf16.mxu0 %vm254_vm0, %v1269_v9  ;;  %1234 = vmatprep.mubr.msk.bf16.mxu1 %vm254_vm0, %v1270_v10 }
  0x16   :  { %1203 = vmatmul.mubr.msk.bf16.gmra.mxu0 %vm254_vm0, %v1271_v11  ;;  %1235 = vmatmul.mubr.msk.bf16.gmra.mxu1 %vm254_vm0, %v1272_v12 }
  0x17   :  { %1206 = vmatprep.mubr.msk.bf16.mxu0 %vm254_vm0, %v1273_v13  ;;  %1238 = vmatprep.mubr.msk.bf16.mxu1 %vm254_vm0, %v1274_v14 }
  0x1e   :  { %1207 = vmatmul.mubr.msk.bf16.gmra.mxu0 %vm254_vm0, %v1275_v15  ;;  %1239 = vmatmul.mubr.msk.bf16.gmra.mxu1 %vm254_vm0, %v1276_v16 }
  0x1f   :  { %1210 = vmatprep.mubr.msk.bf16.mxu0 %vm254_vm0, %v1277_v17  ;;  %1242 = vmatprep.mubr.msk.bf16.mxu1 %vm254_vm0, %v1278_v18 }
  0x26   :  { %1211 = vmatmul.mubr.msk.bf16.gmra.mxu0 %vm254_vm0, %v1279_v19  ;;  %1243 = vmatmul.mubr.msk.bf16.gmra.mxu1 %vm254_vm0, %v1280_v20 }
  0x27   :  { %1214 = vmatprep.mubr.msk.bf16.mxu0 %vm254_vm0, %v1281_v21  ;;  %1246 = vmatprep.mubr.msk.bf16.mxu1 %vm254_vm0, %v1282_v22 }
  0x2e   :  { %1215 = vmatmul.mubr.msk.bf16.gmra.mxu0 %vm254_vm0, %v1283_v23  ;;  %1247 = vmatmul.mubr.msk.bf16.gmra.mxu1 %vm254_vm0, %v1284_v24 }
  0x2f   :  { %1218 = vmatprep.mubr.msk.bf16.mxu0 %vm254_vm0, %v1285_v25  ;;  %1250 = vmatprep.mubr.msk.bf16.mxu1 %vm254_vm0, %v1286_v26 }
  0x36   :  { %1219 = vmatmul.mubr.msk.bf16.gmra.mxu0 %vm254_vm0, %v1287_v27  ;;  %1251 = vmatmul.mubr.msk.bf16.gmra.mxu1 %vm254_vm0, %v1288_v28 }
  0x37   :  { %1222 = vmatprep.mubr.msk.bf16.mxu0 %vm254_vm0, %v1289_v29  ;;  %1254 = vmatprep.mubr.msk.bf16.mxu1 %vm254_vm0, %v1290_v30 }
  0x3e   :  { %1223 = vmatmul.mubr.msk.bf16.gmra.mxu0 %vm254_vm0, %v1291_v31  ;;  %1255 = vmatmul.mubr.msk.bf16.gmra.mxu1 %vm254_vm0, %v1292_v32 }
  0xc6   :  { %v1196_v34 = vpop.f32.mrf.mxu0  ;;  %v1228_v35 = vpop.f32.mrf.mxu1 }
  0xc7   :  { %v394_v36 = vadd.f32 %v1196_v34, %v1447_v33  ;;  %v522_v37 = vadd.f32 %v1228_v35, %v1447_v33 }
  0xc8   :  { %v385_v38 = vpop.f32.mrf.mxu0  ;;  %v513_v39 = vpop.f32.mrf.mxu1 }
  0xc9   :  { %v1097_v40 = vpack.c.bf16 %v394_v36, %v394_v36  ;;  %v1129_v41 = vpack.c.bf16 %v522_v37, %v522_v37  ;;  %v386_v42 = vadd.f32 %v1447_v33, %v385_v38  ;;  %v514_v43 = vadd.f32 %v1447_v33, %v513_v39 }
  0xca   :  { %v1197_v44 = vpop.f32.mrf.mxu0  ;;  %v1229_v45 = vpop.f32.mrf.mxu1 }
  0xcb   :  { %899 = vst.msk [vmem:[%s1772_s3 + $0x8] sm:$0xf] %vm896_vm1, %v1097_v40  ;;  %931 = vst.msk [vmem:[%s1772_s3 + $0x88] sm:$0xf] %vm896_vm1, %v1129_v41  ;;  %v1095_v46 = vpack.c.bf16 %v386_v42, %v386_v42  ;;  %v1127_v47 = vpack.c.bf16 %v514_v43, %v514_v43  ;;  %v397_v48 = vadd.f32 %v1197_v44, %v1447_v33 }
  0xcc   :  { %v525_v49 = vadd.f32 %v1229_v45, %v1447_v33  ;;  %v388_v50 = vpop.f32.mrf.mxu0  ;;  %v516_v51 = vpop.f32.mrf.mxu1 }
  0xcd   :  { %897 = vst.msk [vmem:[%s1772_s3] sm:$0xf] %vm896_vm1, %v1095_v46  ;;  %929 = vst.msk [vmem:[%s1772_s3 + $0x80] sm:$0xf] %vm896_vm1, %v1127_v47  ;;  %v1098_v52 = vpack.c.bf16 %v397_v48, %v397_v48  ;;  %v389_v54 = vadd.f32 %v1447_v33, %v388_v50  ;;  %v517_v55 = vadd.f32 %v1447_v33, %v516_v51 }
  0xce   :  { %v1130_v53 = vpack.c.bf16 %v525_v49, %v525_v49  ;;  %v1200_v56 = vpop.f32.mrf.mxu0  ;;  %v1232_v57 = vpop.f32.mrf.mxu1 }
  0xcf   :  { %900 = vst.msk [vmem:[%s1772_s3 + $0xc] sm:$0xf] %vm896_vm1, %v1098_v52  ;;  %v1096_v58 = vpack.c.bf16 %v389_v54, %v389_v54  ;;  %v1128_v59 = vpack.c.bf16 %v517_v55, %v517_v55  ;;  %v410_v60 = vadd.f32 %v1200_v56, %v1447_v33  ;;  %v538_v61 = vadd.f32 %v1232_v57, %v1447_v33 }
  0xd0   :  { %932 = vst.msk [vmem:[%s1772_s3 + $0x8c] sm:$0xf] %vm896_vm1, %v1130_v53  ;;  %v401_v62 = vpop.f32.mrf.mxu0  ;;  %v529_v63 = vpop.f32.mrf.mxu1 }
  0xd1   :  { %898 = vst.msk [vmem:[%s1772_s3 + $0x4] sm:$0xf] %vm896_vm1, %v1096_v58  ;;  %930 = vst.msk [vmem:[%s1772_s3 + $0x84] sm:$0xf] %vm896_vm1, %v1128_v59  ;;  %v1101_v0 = vpack.c.bf16 %v410_v60, %v410_v60  ;;  %v1133_v1 = vpack.c.bf16 %v538_v61, %v538_v61  ;;  %v402_v2 = vadd.f32 %v1447_v33, %v401_v62 }
  0xd2   :  { %v530_v3 = vadd.f32 %v1447_v33, %v529_v63  ;;  %v1201_v4 = vpop.f32.mrf.mxu0  ;;  %v1233_v5 = vpop.f32.mrf.mxu1 }
  0xd3   :  { %903 = vst.msk [vmem:[%s1772_s3 + $0x18] sm:$0xf] %vm896_vm1, %v1101_v0  ;;  %935 = vst.msk [vmem:[%s1772_s3 + $0x98] sm:$0xf] %vm896_vm1, %v1133_v1  ;;  %v1099_v6 = vpack.c.bf16 %v402_v2, %v402_v2  ;;  %v413_v8 = vadd.f32 %v1201_v4, %v1447_v33  ;;  %v541_v9 = vadd.f32 %v1233_v5, %v1447_v33 }
  0xd4   :  { %v1131_v7 = vpack.c.bf16 %v530_v3, %v530_v3  ;;  %v404_v10 = vpop.f32.mrf.mxu0  ;;  %v532_v11 = vpop.f32.mrf.mxu1 }
  0xd5   :  { %901 = vst.msk [vmem:[%s1772_s3 + $0x10] sm:$0xf] %vm896_vm1, %v1099_v6  ;;  %v1102_v12 = vpack.c.bf16 %v413_v8, %v413_v8  ;;  %v1134_v13 = vpack.c.bf16 %v541_v9, %v541_v9  ;;  %v405_v14 = vadd.f32 %v1447_v33, %v404_v10  ;;  %v533_v15 = vadd.f32 %v1447_v33, %v532_v11 }
  0xd6   :  { %933 = vst.msk [vmem:[%s1772_s3 + $0x90] sm:$0xf] %vm896_vm1, %v1131_v7  ;;  %v1204_v16 = vpop.f32.mrf.mxu0  ;;  %v1236_v17 = vpop.f32.mrf.mxu1 }
  0xd7   :  { %904 = vst.msk [vmem:[%s1772_s3 + $0x1c] sm:$0xf] %vm896_vm1, %v1102_v12  ;;  %936 = vst.msk [vmem:[%s1772_s3 + $0x9c] sm:$0xf] %vm896_vm1, %v1134_v13  ;;  %v1100_v18 = vpack.c.bf16 %v405_v14, %v405_v14  ;;  %v1132_v19 = vpack.c.bf16 %v533_v15, %v533_v15  ;;  %v426_v20 = vadd.f32 %v1204_v16, %v1447_v33 }
  0xd8   :  { %v554_v21 = vadd.f32 %v1236_v17, %v1447_v33  ;;  %v417_v22 = vpop.f32.mrf.mxu0  ;;  %v545_v23 = vpop.f32.mrf.mxu1 }
  0xd9   :  { %902 = vst.msk [vmem:[%s1772_s3 + $0x14] sm:$0xf] %vm896_vm1, %v1100_v18  ;;  %934 = vst.msk [vmem:[%s1772_s3 + $0x94] sm:$0xf] %vm896_vm1, %v1132_v19  ;;  %v1105_v24 = vpack.c.bf16 %v426_v20, %v426_v20  ;;  %v418_v26 = vadd.f32 %v1447_v33, %v417_v22  ;;  %v546_v27 = vadd.f32 %v1447_v33, %v545_v23 }
  0xda   :  { %v1137_v25 = vpack.c.bf16 %v554_v21, %v554_v21  ;;  %v1205_v28 = vpop.f32.mrf.mxu0  ;;  %v1237_v29 = vpop.f32.mrf.mxu1 }
  0xdb   :  { %907 = vst.msk [vmem:[%s1772_s3 + $0x28] sm:$0xf] %vm896_vm1, %v1105_v24  ;;  %v1103_v30 = vpack.c.bf16 %v418_v26, %v418_v26  ;;  %v1135_v31 = vpack.c.bf16 %v546_v27, %v546_v27  ;;  %v429_v32 = vadd.f32 %v1205_v28, %v1447_v33  ;;  %v557_v34 = vadd.f32 %v1237_v29, %v1447_v33 }
  0xdc   :  { %939 = vst.msk [vmem:[%s1772_s3 + $0xa8] sm:$0xf] %vm896_vm1, %v1137_v25  ;;  %v420_v35 = vpop.f32.mrf.mxu0  ;;  %v548_v36 = vpop.f32.mrf.mxu1 }
  0xdd   :  { %905 = vst.msk [vmem:[%s1772_s3 + $0x20] sm:$0xf] %vm896_vm1, %v1103_v30  ;;  %937 = vst.msk [vmem:[%s1772_s3 + $0xa0] sm:$0xf] %vm896_vm1, %v1135_v31  ;;  %v1106_v37 = vpack.c.bf16 %v429_v32, %v429_v32  ;;  %v1138_v38 = vpack.c.bf16 %v557_v34, %v557_v34  ;;  %v421_v39 = vadd.f32 %v1447_v33, %v420_v35 }
  0xde   :  { %v549_v40 = vadd.f32 %v1447_v33, %v548_v36  ;;  %v1208_v41 = vpop.f32.mrf.mxu0  ;;  %v1240_v42 = vpop.f32.mrf.mxu1 }
  0xdf   :  { %908 = vst.msk [vmem:[%s1772_s3 + $0x2c] sm:$0xf] %vm896_vm1, %v1106_v37  ;;  %940 = vst.msk [vmem:[%s1772_s3 + $0xac] sm:$0xf] %vm896_vm1, %v1138_v38  ;;  %v1104_v43 = vpack.c.bf16 %v421_v39, %v421_v39  ;;  %v442_v45 = vadd.f32 %v1208_v41, %v1447_v33  ;;  %v570_v46 = vadd.f32 %v1240_v42, %v1447_v33 }
  0xe0   :  { %v1136_v44 = vpack.c.bf16 %v549_v40, %v549_v40  ;;  %v433_v47 = vpop.f32.mrf.mxu0  ;;  %v561_v48 = vpop.f32.mrf.mxu1 }
  0xe1   :  { %906 = vst.msk [vmem:[%s1772_s3 + $0x24] sm:$0xf] %vm896_vm1, %v1104_v43  ;;  %v1109_v49 = vpack.c.bf16 %v442_v45, %v442_v45  ;;  %v1141_v50 = vpack.c.bf16 %v570_v46, %v570_v46  ;;  %v434_v51 = vadd.f32 %v1447_v33, %v433_v47  ;;  %v562_v52 = vadd.f32 %v1447_v33, %v561_v48 }
  0xe2   :  { %938 = vst.msk [vmem:[%s1772_s3 + $0xa4] sm:$0xf] %vm896_vm1, %v1136_v44  ;;  %v1209_v53 = vpop.f32.mrf.mxu0  ;;  %v1241_v54 = vpop.f32.mrf.mxu1 }
  0xe3   :  { %911 = vst.msk [vmem:[%s1772_s3 + $0x38] sm:$0xf] %vm896_vm1, %v1109_v49  ;;  %943 = vst.msk [vmem:[%s1772_s3 + $0xb8] sm:$0xf] %vm896_vm1, %v1141_v50  ;;  %v1107_v55 = vpack.c.bf16 %v434_v51, %v434_v51  ;;  %v1139_v56 = vpack.c.bf16 %v562_v52, %v562_v52  ;;  %v445_v57 = vadd.f32 %v1209_v53, %v1447_v33 }
  0xe4   :  { %v573_v58 = vadd.f32 %v1241_v54, %v1447_v33  ;;  %v436_v59 = vpop.f32.mrf.mxu0  ;;  %v564_v60 = vpop.f32.mrf.mxu1 }
  0xe5   :  { %909 = vst.msk [vmem:[%s1772_s3 + $0x30] sm:$0xf] %vm896_vm1, %v1107_v55  ;;  %941 = vst.msk [vmem:[%s1772_s3 + $0xb0] sm:$0xf] %vm896_vm1, %v1139_v56  ;;  %v1110_v61 = vpack.c.bf16 %v445_v57, %v445_v57  ;;  %v437_v63 = vadd.f32 %v1447_v33, %v436_v59  ;;  %v565_v0 = vadd.f32 %v1447_v33, %v564_v60 }
  0xe6   :  { %v1142_v62 = vpack.c.bf16 %v573_v58, %v573_v58  ;;  %v1212_v1 = vpop.f32.mrf.mxu0  ;;  %v1244_v2 = vpop.f32.mrf.mxu1 }
  0xe7   :  { %912 = vst.msk [vmem:[%s1772_s3 + $0x3c] sm:$0xf] %vm896_vm1, %v1110_v61  ;;  %v1108_v3 = vpack.c.bf16 %v437_v63, %v437_v63  ;;  %v1140_v4 = vpack.c.bf16 %v565_v0, %v565_v0  ;;  %v458_v5 = vadd.f32 %v1212_v1, %v1447_v33  ;;  %v586_v6 = vadd.f32 %v1244_v2, %v1447_v33 }
  0xe8   :  { %944 = vst.msk [vmem:[%s1772_s3 + $0xbc] sm:$0xf] %vm896_vm1, %v1142_v62  ;;  %v449_v7 = vpop.f32.mrf.mxu0  ;;  %v577_v8 = vpop.f32.mrf.mxu1 }
  0xe9   :  { %910 = vst.msk [vmem:[%s1772_s3 + $0x34] sm:$0xf] %vm896_vm1, %v1108_v3  ;;  %942 = vst.msk [vmem:[%s1772_s3 + $0xb4] sm:$0xf] %vm896_vm1, %v1140_v4  ;;  %v1113_v9 = vpack.c.bf16 %v458_v5, %v458_v5  ;;  %v1145_v10 = vpack.c.bf16 %v586_v6, %v586_v6  ;;  %v450_v11 = vadd.f32 %v1447_v33, %v449_v7 }
  0xea   :  { %v578_v12 = vadd.f32 %v1447_v33, %v577_v8  ;;  %v1213_v13 = vpop.f32.mrf.mxu0  ;;  %v1245_v14 = vpop.f32.mrf.mxu1 }
  0xeb   :  { %915 = vst.msk [vmem:[%s1772_s3 + $0x48] sm:$0xf] %vm896_vm1, %v1113_v9  ;;  %947 = vst.msk [vmem:[%s1772_s3 + $0xc8] sm:$0xf] %vm896_vm1, %v1145_v10  ;;  %v1111_v15 = vpack.c.bf16 %v450_v11, %v450_v11  ;;  %v461_v17 = vadd.f32 %v1213_v13, %v1447_v33  ;;  %v589_v18 = vadd.f32 %v1245_v14, %v1447_v33 }
  0xec   :  { %v1143_v16 = vpack.c.bf16 %v578_v12, %v578_v12  ;;  %v452_v19 = vpop.f32.mrf.mxu0  ;;  %v580_v20 = vpop.f32.mrf.mxu1 }
  0xed   :  { %913 = vst.msk [vmem:[%s1772_s3 + $0x40] sm:$0xf] %vm896_vm1, %v1111_v15  ;;  %v1114_v21 = vpack.c.bf16 %v461_v17, %v461_v17  ;;  %v1146_v22 = vpack.c.bf16 %v589_v18, %v589_v18  ;;  %v453_v23 = vadd.f32 %v1447_v33, %v452_v19  ;;  %v581_v24 = vadd.f32 %v1447_v33, %v580_v20 }
  0xee   :  { %945 = vst.msk [vmem:[%s1772_s3 + $0xc0] sm:$0xf] %vm896_vm1, %v1143_v16  ;;  %v1216_v25 = vpop.f32.mrf.mxu0  ;;  %v1248_v26 = vpop.f32.mrf.mxu1 }
  0xef   :  { %916 = vst.msk [vmem:[%s1772_s3 + $0x4c] sm:$0xf] %vm896_vm1, %v1114_v21  ;;  %948 = vst.msk [vmem:[%s1772_s3 + $0xcc] sm:$0xf] %vm896_vm1, %v1146_v22  ;;  %v1112_v27 = vpack.c.bf16 %v453_v23, %v453_v23  ;;  %v1144_v28 = vpack.c.bf16 %v581_v24, %v581_v24  ;;  %v474_v29 = vadd.f32 %v1216_v25, %v1447_v33 }
  0xf0   :  { %v602_v30 = vadd.f32 %v1248_v26, %v1447_v33  ;;  %v465_v31 = vpop.f32.mrf.mxu0  ;;  %v593_v32 = vpop.f32.mrf.mxu1 }
  0xf1   :  { %914 = vst.msk [vmem:[%s1772_s3 + $0x44] sm:$0xf] %vm896_vm1, %v1112_v27  ;;  %946 = vst.msk [vmem:[%s1772_s3 + $0xc4] sm:$0xf] %vm896_vm1, %v1144_v28  ;;  %v1117_v34 = vpack.c.bf16 %v474_v29, %v474_v29  ;;  %v466_v36 = vadd.f32 %v1447_v33, %v465_v31  ;;  %v594_v37 = vadd.f32 %v1447_v33, %v593_v32 }
  0xf2   :  { %v1149_v35 = vpack.c.bf16 %v602_v30, %v602_v30  ;;  %v1217_v38 = vpop.f32.mrf.mxu0  ;;  %v1249_v39 = vpop.f32.mrf.mxu1 }
  0xf3   :  { %919 = vst.msk [vmem:[%s1772_s3 + $0x58] sm:$0xf] %vm896_vm1, %v1117_v34  ;;  %v1115_v40 = vpack.c.bf16 %v466_v36, %v466_v36  ;;  %v1147_v41 = vpack.c.bf16 %v594_v37, %v594_v37  ;;  %v477_v42 = vadd.f32 %v1217_v38, %v1447_v33  ;;  %v605_v43 = vadd.f32 %v1249_v39, %v1447_v33 }
  0xf4   :  { %951 = vst.msk [vmem:[%s1772_s3 + $0xd8] sm:$0xf] %vm896_vm1, %v1149_v35  ;;  %v468_v44 = vpop.f32.mrf.mxu0  ;;  %v596_v45 = vpop.f32.mrf.mxu1 }
  0xf5   :  { %917 = vst.msk [vmem:[%s1772_s3 + $0x50] sm:$0xf] %vm896_vm1, %v1115_v40  ;;  %949 = vst.msk [vmem:[%s1772_s3 + $0xd0] sm:$0xf] %vm896_vm1, %v1147_v41  ;;  %v1118_v46 = vpack.c.bf16 %v477_v42, %v477_v42  ;;  %v1150_v47 = vpack.c.bf16 %v605_v43, %v605_v43  ;;  %v469_v48 = vadd.f32 %v1447_v33, %v468_v44 }
  0xf6   :  { %v597_v49 = vadd.f32 %v1447_v33, %v596_v45  ;;  %v1220_v50 = vpop.f32.mrf.mxu0  ;;  %v1252_v51 = vpop.f32.mrf.mxu1 }
  0xf7   :  { %920 = vst.msk [vmem:[%s1772_s3 + $0x5c] sm:$0xf] %vm896_vm1, %v1118_v46  ;;  %952 = vst.msk [vmem:[%s1772_s3 + $0xdc] sm:$0xf] %vm896_vm1, %v1150_v47  ;;  %v1116_v52 = vpack.c.bf16 %v469_v48, %v469_v48  ;;  %v490_v54 = vadd.f32 %v1220_v50, %v1447_v33  ;;  %v618_v55 = vadd.f32 %v1252_v51, %v1447_v33 }
  0xf8   :  { %v1148_v53 = vpack.c.bf16 %v597_v49, %v597_v49  ;;  %v481_v56 = vpop.f32.mrf.mxu0  ;;  %v609_v57 = vpop.f32.mrf.mxu1 }
  0xf9   :  { %918 = vst.msk [vmem:[%s1772_s3 + $0x54] sm:$0xf] %vm896_vm1, %v1116_v52  ;;  %v1121_v58 = vpack.c.bf16 %v490_v54, %v490_v54  ;;  %v1153_v59 = vpack.c.bf16 %v618_v55, %v618_v55  ;;  %v482_v60 = vadd.f32 %v1447_v33, %v481_v56  ;;  %v610_v61 = vadd.f32 %v1447_v33, %v609_v57 }
  0xfa   :  { %950 = vst.msk [vmem:[%s1772_s3 + $0xd4] sm:$0xf] %vm896_vm1, %v1148_v53  ;;  %v1221_v62 = vpop.f32.mrf.mxu0  ;;  %v1253_v63 = vpop.f32.mrf.mxu1 }
  0xfb   :  { %923 = vst.msk [vmem:[%s1772_s3 + $0x68] sm:$0xf] %vm896_vm1, %v1121_v58  ;;  %955 = vst.msk [vmem:[%s1772_s3 + $0xe8] sm:$0xf] %vm896_vm1, %v1153_v59  ;;  %v1119_v0 = vpack.c.bf16 %v482_v60, %v482_v60  ;;  %v1151_v1 = vpack.c.bf16 %v610_v61, %v610_v61  ;;  %v493_v2 = vadd.f32 %v1221_v62, %v1447_v33 }
  0xfc   :  { %v621_v3 = vadd.f32 %v1253_v63, %v1447_v33  ;;  %v484_v4 = vpop.f32.mrf.mxu0  ;;  %v612_v5 = vpop.f32.mrf.mxu1 }
  0xfd   :  { %921 = vst.msk [vmem:[%s1772_s3 + $0x60] sm:$0xf] %vm896_vm1, %v1119_v0  ;;  %953 = vst.msk [vmem:[%s1772_s3 + $0xe0] sm:$0xf] %vm896_vm1, %v1151_v1  ;;  %v1122_v6 = vpack.c.bf16 %v493_v2, %v493_v2  ;;  %v485_v8 = vadd.f32 %v1447_v33, %v484_v4  ;;  %v613_v9 = vadd.f32 %v1447_v33, %v612_v5 }
  0xfe   :  { %v1154_v7 = vpack.c.bf16 %v621_v3, %v621_v3  ;;  %v1224_v10 = vpop.f32.mrf.mxu0  ;;  %v1256_v11 = vpop.f32.mrf.mxu1 }
  0xff   :  { %924 = vst.msk [vmem:[%s1772_s3 + $0x6c] sm:$0xf] %vm896_vm1, %v1122_v6  ;;  %v1120_v12 = vpack.c.bf16 %v485_v8, %v485_v8  ;;  %v1152_v13 = vpack.c.bf16 %v613_v9, %v613_v9  ;;  %v506_v14 = vadd.f32 %v1224_v10, %v1447_v33  ;;  %v634_v15 = vadd.f32 %v1256_v11, %v1447_v33 }
 0x100   :  { %956 = vst.msk [vmem:[%s1772_s3 + $0xec] sm:$0xf] %vm896_vm1, %v1154_v7  ;;  %v497_v16 = vpop.f32.mrf.mxu0  ;;  %v625_v17 = vpop.f32.mrf.mxu1 }
 0x101   :  { %922 = vst.msk [vmem:[%s1772_s3 + $0x64] sm:$0xf] %vm896_vm1, %v1120_v12  ;;  %954 = vst.msk [vmem:[%s1772_s3 + $0xe4] sm:$0xf] %vm896_vm1, %v1152_v13  ;;  %v1125_v18 = vpack.c.bf16 %v506_v14, %v506_v14  ;;  %v1157_v19 = vpack.c.bf16 %v634_v15, %v634_v15  ;;  %v498_v20 = vadd.f32 %v1447_v33, %v497_v16 }
 0x102   :  { %v626_v21 = vadd.f32 %v1447_v33, %v625_v17  ;;  %v1225_v22 = vpop.f32.mrf.mxu0  ;;  %v1257_v23 = vpop.f32.mrf.mxu1 }
 0x103   :  { %927 = vst.msk [vmem:[%s1772_s3 + $0x78] sm:$0xf] %vm896_vm1, %v1125_v18  ;;  %959 = vst.msk [vmem:[%s1772_s3 + $0xf8] sm:$0xf] %vm896_vm1, %v1157_v19  ;;  %v1123_v24 = vpack.c.bf16 %v498_v20, %v498_v20  ;;  %v509_v26 = vadd.f32 %v1225_v22, %v1447_v33  ;;  %v637_v27 = vadd.f32 %v1257_v23, %v1447_v33 }
 0x104   :  { %v1155_v25 = vpack.c.bf16 %v626_v21, %v626_v21  ;;  %v500_v28 = vpop.f32.mrf.mxu0  ;;  %v628_v29 = vpop.f32.mrf.mxu1 }
 0x105   :  { %925 = vst.msk [vmem:[%s1772_s3 + $0x70] sm:$0xf] %vm896_vm1, %v1123_v24  ;;  %v1126_v30 = vpack.c.bf16 %v509_v26, %v509_v26  ;;  %v1158_v31 = vpack.c.bf16 %v637_v27, %v637_v27  ;;  %v501_v32 = vadd.f32 %v1447_v33, %v500_v28  ;;  %v629_v34 = vadd.f32 %v1447_v33, %v628_v29 }
 0x106   :  { %957 = vst.msk [vmem:[%s1772_s3 + $0xf0] sm:$0xf] %vm896_vm1, %v1155_v25 }
 0x107   :  { %928 = vst.msk [vmem:[%s1772_s3 + $0x7c] sm:$0xf] %vm896_vm1, %v1126_v30  ;;  %960 = vst.msk [vmem:[%s1772_s3 + $0xfc] sm:$0xf] %vm896_vm1, %v1158_v31  ;;  %v1124_v35 = vpack.c.bf16 %v501_v32, %v501_v32  ;;  %v1156_v36 = vpack.c.bf16 %v629_v34, %v629_v34 }
 0x109   :  { %926 = vst.msk [vmem:[%s1772_s3 + $0x74] sm:$0xf] %vm896_vm1, %v1124_v35  ;;  %958 = vst.msk [vmem:[%s1772_s3 + $0xf4] sm:$0xf] %vm896_vm1, %v1156_v36 }

</bundles_post_ra>
